<compile_context>
chip_gen: v6e
topology: v6e:2x2x1
jax: 0.10.0
libtpu: 0.0.40
codegen_flags: <defaults>
</compile_context>

<pallas_src>
import jax
import jax.numpy as jnp
from jax.experimental import pallas as pl
from jax.experimental.pallas import tpu as pltpu


_NEG_FILL = -1e30  # logits fill for padded vocab columns (exp() == 0 in f32/bf16)


def _round_up(x, m):
    return ((x + m - 1) // m) * m


def _mlm_kernel(x_ref, wt_ref, b_ref, o_ref, m_ref, l_ref):
    """One (row-tile i, vocab-tile j) grid step.

    x_ref:  (TM, H)      activations, resident across the vocab sweep
    wt_ref: (H, TV)      pre-transposed weight tile (lane-dense in V)
    b_ref:  (1, V_pad)   f32 bias, resident (constant index_map -> no re-DMA)
    o_ref:  (TM, V_pad)  resident output block: raw logits, then log-probs
    m_ref:  (TM, 1) f32  running max
    l_ref:  (TM, 1) f32  running sum of exp(logit - m)
    """
    j = pl.program_id(1)
    nj = pl.num_programs(1)
    tv = wt_ref.shape[1]

    @pl.when(j == 0)
    def _():
        m_ref[...] = jnp.full_like(m_ref, -jnp.inf)
        l_ref[...] = jnp.zeros_like(l_ref)

    col = pl.multiple_of(j * tv, 128)

    # MXU: (TM, H) @ (H, TV) with a float32 accumulator; bias add in f32.
    logits = jnp.dot(x_ref[...], wt_ref[...],
                     preferred_element_type=jnp.float32)
    logits = logits + b_ref[:, pl.ds(col, tv)]

    # Lane-dense store of raw logits into the resident output block.
    o_ref[:, pl.ds(col, tv)] = logits.astype(o_ref.dtype)

    # Online-softmax statistics in f32 (overlaps the next tile's MXU work).
    m_old = m_ref[...]
    m_new = jnp.maximum(m_old, jnp.max(logits, axis=-1, keepdims=True))
    l_ref[...] = (l_ref[...] * jnp.exp(m_old - m_new)
                  + jnp.sum(jnp.exp(logits - m_new), axis=-1, keepdims=True))
    m_ref[...] = m_new

    # Finalize: single chunked pass o -= (m + log l); no (TM, V_pad) f32 temps.
    @pl.when(j == nj - 1)
    def _():
        lse = m_ref[...] + jnp.log(l_ref[...])          # (TM, 1) f32

        @pl.loop(0, nj)
        def _(t):
            c = pl.multiple_of(t * tv, 128)
            chunk = o_ref[:, pl.ds(c, tv)].astype(jnp.float32)
            o_ref[:, pl.ds(c, tv)] = (chunk - lse).astype(o_ref.dtype)


def prepare_mlm_params(weight, bias, *, tv_max=1024, compute_dtype=None):
    """One-time parameter prep (do this at parameter load, NOT per forward).

    weight: (V, H) PyTorch Linear weight layout; bias: (V,)
    Returns (w_t, b2d, vocab_size, TV):
      w_t: (H, V_pad) pre-transposed / vocab-padded weight (lane-dense in V),
      b2d: (1, V_pad) f32 bias; padded classes filled with a large negative
           so they contribute exp() == 0 to the log-sum-exp.
    """
    V, H = weight.shape
    assert bias.shape == (V,)
    tv_max = max(128, (int(tv_max) // 128) * 128)
    TV = min(tv_max, _round_up(V, 128))
    V_pad = TV * pl.cdiv(V, TV)

    w = weight if compute_dtype is None else weight.astype(compute_dtype)
    w_t = jnp.pad(w, ((0, V_pad - V), (0, 0))).T                # (H, V_pad)
    b2d = jnp.pad(bias.astype(jnp.float32), (0, V_pad - V),
                  constant_values=_NEG_FILL).reshape(1, V_pad)
    return w_t, b2d, V, TV


def _vmem_budget():
    """Returns (vmem_limit_bytes, tile_budget_bytes) for the current chip."""
    try:
        cap = int(pltpu.get_tpu_info().vmem_capacity_bytes)
    except Exception:
        cap = 64 * 1024 * 1024            # v7x per-TC floor; safe everywhere
    limit = max(32 * 1024 * 1024,
                min(cap - 8 * 1024 * 1024, 120 * 1024 * 1024))
    return limit, int(limit * 0.80)


def mlm_forward(x, w_t, b2d, vocab_size, tv, *, tm_max=1024, compute_dtype=None):
    """log_softmax(x @ W.T + b): x (..., H) -> (..., vocab_size) in x.dtype."""
    out_dtype = x.dtype
    lead = x.shape[:-1]
    H = x.shape[-1]
    H_w, V_pad = w_t.shape
    assert H == H_w and V_pad % tv == 0

    M = 1
    for d in lead:
        M *= int(d)
    x2 = x.reshape(M, H)
    if compute_dtype is not None:
        x2 = x2.astype(compute_dtype)

    elt_x = jnp.dtype(x2.dtype).itemsize
    elt_w = jnp.dtype(w_t.dtype).itemsize
    elt_o = jnp.dtype(out_dtype).itemsize

    vmem_limit, tile_budget = _vmem_budget()

    # VMEM accounting (Pallas double-buffers pipelined blocks; the resident
    # output block is conservatively counted twice as well).
    fixed = 2 * H * tv * elt_w + 2 * V_pad * 4                # W tiles + bias
    per_row = 2 * V_pad * elt_o + 2 * H * elt_x + 2 * 128 * 4  # out + x + stats
    tm = max(8, (tile_budget - fixed) // per_row)
    tm = (tm // 256) * 256 if tm >= 256 else (tm // 8) * 8     # full MXU passes
    tm = min(tm, int(tm_max), _round_up(M, 8))
    tm = max(tm, 8)

    M_pad = tm * pl.cdiv(M, tm)
    if M_pad != M:
        x2 = jnp.pad(x2, ((0, M_pad - M), (0, 0)))

    grid = (M_pad // tm, V_pad // tv)
    n_row_tiles = grid[0]

    cost = pl.CostEstimate(
        flops=2 * M_pad * H * V_pad,
        transcendentals=M_pad * V_pad + M_pad,
        bytes_accessed=(M_pad * H * elt_x                     # x read once
                        + n_row_tiles * H * V_pad * elt_w     # W re-streamed per row tile
                        + V_pad * 4                           # bias (resident)
                        + M_pad * V_pad * elt_o),             # output written once
    )

    out = pl.pallas_call(
        _mlm_kernel,
        out_shape=jax.ShapeDtypeStruct((M_pad, V_pad), out_dtype),
        grid=grid,
        in_specs=[
            pl.BlockSpec((tm, H), lambda i, j: (i, 0)),       # x: per row tile
            pl.BlockSpec((H, tv), lambda i, j: (0, j)),       # W^T: streamed over vocab
            pl.BlockSpec((1, V_pad), lambda i, j: (0, 0)),    # bias: resident
        ],
        out_specs=pl.BlockSpec((tm, V_pad), lambda i, j: (i, 0)),  # resident block
        scratch_shapes=[
            pltpu.VMEM((tm, 1), jnp.float32),   # running max
            pltpu.VMEM((tm, 1), jnp.float32),   # running sum-exp
        ],
        compiler_params=pltpu.CompilerParams(
            dimension_semantics=("parallel", "arbitrary"),
            vmem_limit_bytes=int(vmem_limit),
        ),
        cost_estimate=cost,
    )(x2, w_t, b2d)

    # In production keep the vocab permanently padded (and pick batch*seq a
    # multiple of tm) so this slice is a no-op.
    if M_pad != M or V_pad != vocab_size:
        out = out[:M, :vocab_size]
    return out.reshape(*lead, vocab_size)


def masked_language_model(x, weight, bias, *, tv_max=1024, tm_max=1024,
                          compute_dtype=None):
    """Convenience wrapper: one-time param prep + Pallas forward."""
    w_t, b2d, V, tv = prepare_mlm_params(weight, bias, tv_max=tv_max,
                                         compute_dtype=compute_dtype)
    return mlm_forward(x, w_t, b2d, V, tv, tm_max=tm_max,
                       compute_dtype=compute_dtype)


if __name__ == "__main__":
    B, S, H, V = 2, 8, 32, 1000

    key = jax.random.PRNGKey(0)
    kx, kw, kb = jax.random.split(key, 3)

    x = jax.random.normal(kx, (B, S, H), dtype=jnp.float32)
    # Deterministic PyTorch-Linear-like uniform init, bound 1/sqrt(H)
    bound = 1.0 / (H ** 0.5)
    weight = jax.random.uniform(kw, (V, H), minval=-bound, maxval=bound,
                                dtype=jnp.float32)
    bias = jax.random.uniform(kb, (V,), minval=-bound, maxval=bound,
                              dtype=jnp.float32)

    # One-time parameter prep (pad + transpose), then the Pallas forward.
    w_t, b2d, vocab, tv = prepare_mlm_params(weight, bias)
    out = mlm_forward(x, w_t, b2d, vocab, tv)
    out = jax.block_until_ready(out)

    # Plain-JAX reference.
    logits_ref = jnp.einsum("bsh,vh->bsv", x, weight) + bias
    ref = jax.nn.log_softmax(logits_ref, axis=-1)
    assert out.shape == (B, S, V)
    err = jnp.max(jnp.abs(out - ref))
    assert jnp.allclose(out, ref, atol=5e-4, rtol=5e-4), (
        f"mismatch vs reference, max abs err {err}")

    print("KERNEL_OK")
</pallas_src>

<mosaic_0001>
module attributes {stable_mosaic.version = 11 : i64} {
  func.func @_mlm_kernel(%arg0: i32, %arg1: i32, %arg2: memref<16x32xf32, #tpu.memory_space<vmem>>, %arg3: memref<32x1024xf32, #tpu.memory_space<vmem>>, %arg4: memref<1x1024xf32, #tpu.memory_space<vmem>>, %arg5: memref<16x1024xf32, #tpu.memory_space<vmem>>, %arg6: memref<16x1xf32, #tpu.memory_space<vmem>>, %arg7: memref<16x1xf32, #tpu.memory_space<vmem>>) attributes {dimension_semantics = [#tpu.dimension_semantics<parallel>, #tpu.dimension_semantics<arbitrary>], iteration_bounds = array<i64: 1, 1>, scalar_prefetch = 0 : i64, scratch_operands = 2 : i64, tpu.core_type = #tpu.core_type<tc>, window_params = [{transform_indices = @transform_0, window_bounds = array<i64: 16, 32>}, {transform_indices = @transform_1, window_bounds = array<i64: 32, 1024>}, {pipeline_mode = #tpu.pipeline_mode<synchronous>, transform_indices = @transform_2, window_bounds = array<i64: 1, 1024>}, {transform_indices = @transform_3, window_bounds = array<i64: 16, 1024>}]} {
    %c0_i32 = arith.constant 0 : i32
    %0 = arith.cmpi eq, %arg1, %c0_i32 : i32
    %1 = arith.extui %0 : i1 to i32
    %c0_i32_0 = arith.constant 0 : i32
    %2 = arith.cmpi ne, %1, %c0_i32_0 : i32
    scf.if %2 {
      %cst_18 = arith.constant 0xFF800000 : f32
      %33 = vector.broadcast %cst_18 : f32 to vector<16x1xf32>
      %c0_19 = arith.constant 0 : index
      %c0_20 = arith.constant 0 : index
      %34 = vector.load %arg6[%c0_19, %c0_20] : memref<16x1xf32, #tpu.memory_space<vmem>>, vector<16x1xf32>
      tpu.vector_store %arg6[%c0_19, %c0_20], %33 {strides = array<i32>} : memref<16x1xf32, #tpu.memory_space<vmem>>, vector<16x1xf32>,
      %cst_21 = arith.constant 0.000000e+00 : f32
      %35 = vector.broadcast %cst_21 : f32 to vector<16x1xf32>
      %c0_22 = arith.constant 0 : index
      %c0_23 = arith.constant 0 : index
      %36 = vector.load %arg7[%c0_22, %c0_23] : memref<16x1xf32, #tpu.memory_space<vmem>>, vector<16x1xf32>
      tpu.vector_store %arg7[%c0_22, %c0_23], %35 {strides = array<i32>} : memref<16x1xf32, #tpu.memory_space<vmem>>, vector<16x1xf32>,
    } else {
    }
    %c1024_i32 = arith.constant 1024 : i32
    %3 = arith.muli %arg1, %c1024_i32 : i32
    %4 = tpu.assume_multiple %3, 128 : i32
    %c0 = arith.constant 0 : index
    %c0_1 = arith.constant 0 : index
    %5 = vector.load %arg2[%c0, %c0_1] : memref<16x32xf32, #tpu.memory_space<vmem>>, vector<16x32xf32>
    %c0_2 = arith.constant 0 : index
    %c0_3 = arith.constant 0 : index
    %6 = vector.load %arg3[%c0_2, %c0_3] : memref<32x1024xf32, #tpu.memory_space<vmem>>, vector<32x1024xf32>
    %cst = arith.constant dense<0.000000e+00> : vector<16x1024xf32>
    %7 = tpu.matmul %5, %6, %cst {dimension_numbers = #tpu.dot_dimension_numbers<[1], [0], [0], [1], [0, 0, 1, 1], [], []>} : vector<16x32xf32>, vector<32x1024xf32>, vector<16x1024xf32> -> vector<16x1024xf32>
    %c0_4 = arith.constant 0 : index
    %8 = arith.index_cast %4 : i32 to index
    %9 = vector.load %arg4[%c0_4, %8] : memref<1x1024xf32, #tpu.memory_space<vmem>>, vector<1x1024xf32>
    %10 = vector.broadcast %9 : vector<1x1024xf32> to vector<16x1024xf32>
    %11 = arith.addf %7, %10 : vector<16x1024xf32>
    %c0_5 = arith.constant 0 : index
    %12 = arith.index_cast %4 : i32 to index
    %13 = vector.load %arg5[%c0_5, %12] : memref<16x1024xf32, #tpu.memory_space<vmem>>, vector<16x1024xf32>
    tpu.vector_store %arg5[%c0_5, %12], %11 {strides = array<i32>} : memref<16x1024xf32, #tpu.memory_space<vmem>>, vector<16x1024xf32>,
    %c0_6 = arith.constant 0 : index
    %c0_7 = arith.constant 0 : index
    %14 = vector.load %arg6[%c0_6, %c0_7] : memref<16x1xf32, #tpu.memory_space<vmem>>, vector<16x1xf32>
    %cst_8 = arith.constant dense<0xFF800000> : vector<16xf32>
    %15 = vector.multi_reduction <maximumf>, %11, %cst_8 [1] : vector<16x1024xf32> to vector<16xf32>
    %16 = vector.shape_cast %15 : vector<16xf32> to vector<16x1xf32>
    %17 = arith.maximumf %14, %16 : vector<16x1xf32>
    %c0_9 = arith.constant 0 : index
    %c0_10 = arith.constant 0 : index
    %18 = vector.load %arg7[%c0_9, %c0_10] : memref<16x1xf32, #tpu.memory_space<vmem>>, vector<16x1xf32>
    %19 = arith.subf %14, %17 : vector<16x1xf32>
    %20 = math.exp %19 : vector<16x1xf32>
    %21 = arith.mulf %18, %20 : vector<16x1xf32>
    %22 = vector.broadcast %17 : vector<16x1xf32> to vector<16x1024xf32>
    %23 = arith.subf %11, %22 : vector<16x1024xf32>
    %24 = math.exp %23 : vector<16x1024xf32>
    %cst_11 = arith.constant dense<0.000000e+00> : vector<16xf32>
    %25 = vector.multi_reduction <add>, %24, %cst_11 [1] : vector<16x1024xf32> to vector<16xf32>
    %26 = vector.shape_cast %25 : vector<16xf32> to vector<16x1xf32>
    %27 = arith.addf %21, %26 : vector<16x1xf32>
    %c0_12 = arith.constant 0 : index
    %c0_13 = arith.constant 0 : index
    %28 = vector.load %arg7[%c0_12, %c0_13] : memref<16x1xf32, #tpu.memory_space<vmem>>, vector<16x1xf32>
    tpu.vector_store %arg7[%c0_12, %c0_13], %27 {strides = array<i32>} : memref<16x1xf32, #tpu.memory_space<vmem>>, vector<16x1xf32>,
    %c0_14 = arith.constant 0 : index
    %c0_15 = arith.constant 0 : index
    %29 = vector.load %arg6[%c0_14, %c0_15] : memref<16x1xf32, #tpu.memory_space<vmem>>, vector<16x1xf32>
    tpu.vector_store %arg6[%c0_14, %c0_15], %17 {strides = array<i32>} : memref<16x1xf32, #tpu.memory_space<vmem>>, vector<16x1xf32>,
    %c0_i32_16 = arith.constant 0 : i32
    %30 = arith.cmpi eq, %arg1, %c0_i32_16 : i32
    %31 = arith.extui %30 : i1 to i32
    %c0_i32_17 = arith.constant 0 : i32
    %32 = arith.cmpi ne, %31, %c0_i32_17 : i32
    scf.if %32 {
      %c0_18 = arith.constant 0 : index
      %c0_19 = arith.constant 0 : index
      %33 = vector.load %arg6[%c0_18, %c0_19] : memref<16x1xf32, #tpu.memory_space<vmem>>, vector<16x1xf32>
      %c0_20 = arith.constant 0 : index
      %c0_21 = arith.constant 0 : index
      %34 = vector.load %arg7[%c0_20, %c0_21] : memref<16x1xf32, #tpu.memory_space<vmem>>, vector<16x1xf32>
      %35 = math.log %34 : vector<16x1xf32>
      %36 = arith.addf %33, %35 : vector<16x1xf32>
      %c0_i32_22 = arith.constant 0 : i32
      %c1_i32 = arith.constant 1 : i32
      %37 = arith.muli %c0_i32_22, %c1_i32 : i32
      %c0_i32_23 = arith.constant 0 : i32
      %38 = arith.addi %c0_i32_23, %37 : i32
      %c1024_i32_24 = arith.constant 1024 : i32
      %39 = arith.muli %38, %c1024_i32_24 : i32
      %40 = tpu.assume_multiple %39, 128 : i32
      %c0_25 = arith.constant 0 : index
      %41 = arith.index_cast %40 : i32 to index
      %42 = vector.load %arg5[%c0_25, %41] : memref<16x1024xf32, #tpu.memory_space<vmem>>, vector<16x1024xf32>
      %43 = vector.broadcast %36 : vector<16x1xf32> to vector<16x1024xf32>
      %44 = arith.subf %42, %43 : vector<16x1024xf32>
      %c0_26 = arith.constant 0 : index
      %45 = arith.index_cast %40 : i32 to index
      %46 = vector.load %arg5[%c0_26, %45] : memref<16x1024xf32, #tpu.memory_space<vmem>>, vector<16x1024xf32>
      tpu.vector_store %arg5[%c0_26, %45], %44 {strides = array<i32>} : memref<16x1024xf32, #tpu.memory_space<vmem>>, vector<16x1024xf32>,
      %c1_i32_27 = arith.constant 1 : i32
    } else {
    }
    return
  }
  func.func @transform_0(%arg0: i32, %arg1: i32) -> (i32, i32) {
    %c0_i32 = arith.constant 0 : i32
    %c0_i32_0 = arith.constant 0 : i32
    return %arg0, %c0_i32 : i32, i32
  }
  func.func @transform_1(%arg0: i32, %arg1: i32) -> (i32, i32) {
    %c0_i32 = arith.constant 0 : i32
    %c0_i32_0 = arith.constant 0 : i32
    return %c0_i32, %arg1 : i32, i32
  }
  func.func @transform_2(%arg0: i32, %arg1: i32) -> (i32, i32) {
    %c0_i32 = arith.constant 0 : i32
    %c0_i32_0 = arith.constant 0 : i32
    %c0_i32_1 = arith.constant 0 : i32
    return %c0_i32, %c0_i32_0 : i32, i32
  }
  func.func @transform_3(%arg0: i32, %arg1: i32) -> (i32, i32) {
    %c0_i32 = arith.constant 0 : i32
    %c0_i32_0 = arith.constant 0 : i32
    return %arg0, %c0_i32 : i32, i32
  }
}

</mosaic_0001>

<bundles_post_ra>
// kernel: tpu_custom_call.1
= control target key start
LH: loop header
LB: loop body
LE: loop exit
PB: predicated region body
PF: predicated region fallthrough
CT: control target
= control target key end

     0   :  { %8 = vsyncpa [#allocation5], 0  ;;  %s1009_s0 = inlined_call_operand.hbm [shape: f32[16,32], index: 0, kind: input, shape index: {}]   ;;  %s1010_s1 = inlined_call_operand.hbm [shape: f32[32,1024], index: 1, kind: input, shape index: {}]   ;;  %s1011_s2 = inlined_call_operand.hbm [shape: f32[1,1024], index: 2, kind: input, shape index: {}]   ;;  %s1012_s3 = inlined_call_operand.hbm [shape: f32[16,1024], index: 3, kind: output, shape index: {}]  }
   0x1   :  { %9 = vsyncpa [#allocation8], 0 }
   0x2   :  { %10 = vsyncpa [#allocation6], 0  ;;  %s830_s12 = smov [#allocation7]  }
   0x3   :  { %s28_s13 = sshll.u32 %s830_s12, 4  ;;  %s29_s13 = int_to_ptr.vmem [resolvable:$true] %s28_s13 }
   0x4   :  { %s752_s14 = scalar_lea.vmem %s29_s13, 4096  ;;  %p757_p1 = scmp.lt.s32.totalorder %s29_s13, %s29_s13 }
   0x5   :  { %p753_p0 = scmp.ne.s32.totalorder %s29_s13, %s752_s14  ;;  %p758_p2 = scmp.lt.s32.totalorder %s752_s14, %s752_s14 }
   0x7   :  { %p759_p3 = por %p758_p2, %p757_p1 }
   0x9   :  { %p760_p4 = pnand %p759_p3, %p753_p0 }
   0xb   :  { %763 = shalt.err (!%p760_p4)
}
   0xc   :  { %s831_s15 = smov 1024   ;;  %s832_s16 = smov 64  }
   0xd   :  { %34 = dma.hbm_to_vmem [thread:$0]  %s1010_s1, 4096, %s29_s13, [#allocation8], %s831_s15, %s831_s15, %s832_s16  }
   0xe   :  { %s833_s19 = smov [#allocation4]  }
   0xf   :  { %s16_s20 = sshll.u32 %s833_s19, 4  ;;  %s17_s20 = int_to_ptr.vmem [resolvable:$true] %s16_s20 }
  0x10   :  { %s772_s21 = scalar_lea.vmem %s17_s20, 256  ;;  %p777_p6 = scmp.lt.s32.totalorder %s17_s20, %s17_s20 }
  0x11   :  { %p773_p5 = scmp.ne.s32.totalorder %s17_s20, %s772_s21  ;;  %p778_p7 = scmp.lt.s32.totalorder %s772_s21, %s772_s21 }
  0x13   :  { %p779_p8 = por %p778_p7, %p777_p6 }
  0x15   :  { %p780_p9 = pnand %p779_p8, %p773_p5 }
  0x17   :  { %783 = shalt.err (!%p780_p9)
}
  0x18   :  { %s834_s22 = smov 128   ;;  %s835_s23 = smov 8  }
  0x19   :  { %22 = dma.hbm_to_vmem [thread:$0]  %s1009_s0, 256, %s17_s20, [#allocation5], %s834_s22, %s834_s22, %s835_s23  }
  0x1a   :  { %s836_s26 = smov [#allocation9]  }
  0x1b   :  { %s41_s27 = sshll.u32 %s836_s26, 4  ;;  %s42_s27 = int_to_ptr.vmem [resolvable:$true] %s41_s27 }
  0x1c   :  { %s792_s1 = scalar_lea.vmem %s42_s27, 128  ;;  %p797_p11 = scmp.lt.s32.totalorder %s42_s27, %s42_s27 }
  0x1d   :  { %p793_p10 = scmp.ne.s32.totalorder %s42_s27, %s792_s1  ;;  %p798_p12 = scmp.lt.s32.totalorder %s792_s1, %s792_s1 }
  0x1f   :  { %p799_p13 = por %p798_p12, %p797_p11 }
  0x21   :  { %p800_p0 = pnand %p799_p13, %p793_p10 }
  0x23   :  { %803 = shalt.err (!%p800_p0)
}
  0x24   :  { %44 = dma.hbm_to_vmem [thread:$0]  %s1011_s2, 128, %s42_s27, [#allocation8]  }
  0x25   :  { %824 = dma.done.wait [#allocation5], 256  }
  0x26   :  { %825 = vsyncadd [#allocation5], 4294967040 }
  0x27   :  { %826 = dma.done.wait [#allocation8], 4224  }
  0x28   :  { %827 = vsyncadd [#allocation8], 4294963072  ;;  %v837_v0 = vmov 0.0   ;;  %v91_v1 = vld [vmem:[#allocation7 + $0xc8] sm:$0xff]  ;;  %v93_v2 = vld [vmem:[#allocation7 + $0xd8] sm:$0xff]  ;;  %vm143_vm0 = vcmask 261120   ;;  %v103_v36 = vlaneseq }
  0x29   :  { %214 = vmatprep.mubr.f32.mxu0 %v837_v0  ;;  %291 = vmatprep.mubr.f32.mxu1 %v837_v0  ;;  %v90_v3 = vld [vmem:[#allocation7 + $0xc0] sm:$0xff]  ;;  %v92_v4 = vld [vmem:[#allocation7 + $0xd0] sm:$0xff]  ;;  %v83_v5 = vld [vmem:[#allocation7 + $0x88] sm:$0xff]  ;;  %vm58_vm1 = vcmask 7168   ;;  %v838_v35 = vmov -inf   ;;  %s840_s0 = smov [#allocation10]  }
  0x2a   :  { %174 = vmatprep.subr.mxu0 %v91_v1  ;;  %251 = vmatprep.subr.mxu1 %v93_v2  ;;  %v85_v6 = vld [vmem:[#allocation7 + $0x98] sm:$0xff]  ;;  %v82_v7 = vld [vmem:[#allocation7 + $0x80] sm:$0xff]  ;;  %v84_v8 = vld [vmem:[#allocation7 + $0x90] sm:$0xff]  ;;  %59 = vst.msk [vmem:[#allocation2] sm:$0xff] %vm58_vm1, %v838_v35  ;;  %v104_v37 = vshrl.u32 %v103_v36, 7  ;;  %s667_s2 = sshll.u32 %s840_s0, 4  ;;  %s668_s2 = int_to_ptr.vmem [resolvable:$true] %s667_s2 }
  0x2b   :  { %175 = vmatpush1.msra.mxu0 %v90_v3  ;;  %252 = vmatpush1.msra.mxu1 %v92_v4  ;;  %v75_v9 = vld [vmem:[#allocation7 + $0x48] sm:$0xff]  ;;  %v77_v10 = vld [vmem:[#allocation7 + $0x58] sm:$0xff]  ;;  %v74_v11 = vld [vmem:[#allocation7 + $0x40] sm:$0xff]  ;;  %60 = vst.msk [vmem:[#allocation2 + $0x8] sm:$0xff] %vm58_vm1, %v838_v35  ;;  %s804_s30 = scalar_lea.vmem %s668_s2, 2048  ;;  %p809_p2 = scmp.lt.s32.totalorder %s668_s2, %s668_s2 }
  0x2c   :  { %176 = vmatprep.subr.mxu0 %v83_v5  ;;  %253 = vmatprep.subr.mxu1 %v85_v6  ;;  %v76_v12 = vld [vmem:[#allocation7 + $0x50] sm:$0xff]  ;;  %v67_v13 = vld [vmem:[#allocation7 + $0x8] sm:$0xff]  ;;  %v69_v14 = vld [vmem:[#allocation7 + $0x18] sm:$0xff]  ;;  %61 = vst.msk [vmem:[#allocation3] sm:$0xff] %vm58_vm1, %v837_v0  ;;  %v105_v38 = vsub.s32 0, %v104_v37  ;;  %v113_v40 = vsub.s32 2, %v104_v37  ;;  %p805_p1 = scmp.ne.s32.totalorder %s668_s2, %s804_s30  ;;  %p810_p3 = scmp.lt.s32.totalorder %s804_s30, %s804_s30 }
  0x2d   :  { %177 = vmatpush1.msra.mxu0 %v82_v7  ;;  %254 = vmatpush1.msra.mxu1 %v84_v8  ;;  %v66_v15 = vld [vmem:[#allocation7] sm:$0xff]  ;;  %v68_v16 = vld [vmem:[#allocation7 + $0x10] sm:$0xff]  ;;  %v95_v18 = vld [vmem:[#allocation7 + $0xe8] sm:$0xff]  ;;  %62 = vst.msk [vmem:[#allocation3 + $0x8] sm:$0xff] %vm58_vm1, %v837_v0  ;;  %v109_v43 = vsub.s32 1, %v104_v37  ;;  %v117_v45 = vsub.s32 3, %v104_v37 }
  0x2e   :  { %178 = vmatprep.subr.mxu0 %v75_v9  ;;  %255 = vmatprep.subr.mxu1 %v77_v10  ;;  %v64_v17 = vld [vmem:[#allocation4] sm:$0xff]  ;;  %v97_v19 = vld [vmem:[#allocation7 + $0xf8] sm:$0xff]  ;;  %v94_v20 = vld [vmem:[#allocation7 + $0xe0] sm:$0xff]  ;;  %v121_v49 = vsub.s32 4, %v104_v37  ;;  %v129_v54 = vsub.s32 6, %v104_v37  ;;  %v125_v55 = vsub.s32 5, %v104_v37  ;;  %p811_p4 = por %p810_p3, %p809_p2 }
  0x2f   :  { %179 = vmatpush1.msra.mxu0 %v74_v11  ;;  %256 = vmatpush1.msra.mxu1 %v76_v12  ;;  %v96_v21 = vld [vmem:[#allocation7 + $0xf0] sm:$0xff]  ;;  %v87_v22 = vld [vmem:[#allocation7 + $0xa8] sm:$0xff]  ;;  %v86_v23 = vld [vmem:[#allocation7 + $0xa0] sm:$0xff]  ;;  %v133_v57 = vsub.s32 7, %v104_v37  ;;  %v839_v37 = vmov 0  }
  0x30   :  { %180 = vmatprep.subr.mxu0 %v67_v13  ;;  %257 = vmatprep.subr.mxu1 %v69_v14  ;;  %v89_v24 = vld [vmem:[#allocation7 + $0xb8] sm:$0xff]  ;;  %v79_v26 = vld [vmem:[#allocation7 + $0x68] sm:$0xff]  ;;  %v88_v27 = vld [vmem:[#allocation7 + $0xb0] sm:$0xff]  ;;  %p812_p5 = pnand %p811_p4, %p805_p1 }
  0x31   :  { %181 = vmatpush1.msra.mxu0 %v66_v15  ;;  %258 = vmatpush1.msra.mxu1 %v68_v16  ;;  %v65_v25 = vld [vmem:[#allocation4 + $0x8] sm:$0xff]  ;;  %v78_v28 = vld [vmem:[#allocation7 + $0x60] sm:$0xff]  ;;  %v71_v30 = vld [vmem:[#allocation7 + $0x28] sm:$0xff] }
  0x32   :  { %683 = vmatmul.mubr.msk.f32.vlgmr.msra.gmra.mxu0 %vm143_vm0, %v64_v17  ;;  %685 = vmatmul.mubr.msk.f32.vlgmr.msra.gmra.mxu1 %vm143_vm0, %v64_v17  ;;  %v81_v29 = vld [vmem:[#allocation7 + $0x78] sm:$0xff]  ;;  %v80_v31 = vld [vmem:[#allocation7 + $0x70] sm:$0xff]  ;;  %v70_v32 = vld [vmem:[#allocation7 + $0x20] sm:$0xff] }
  0x33   :  { %328 = vmatprep.subr.mxu0 %v95_v18  ;;  %405 = vmatprep.subr.mxu1 %v97_v19  ;;  %v73_v33 = vld [vmem:[#allocation7 + $0x38] sm:$0xff]  ;;  %v72_v34 = vld [vmem:[#allocation7 + $0x30] sm:$0xff]  ;;  %v101_v42 = vld [vmem:[#allocation9] sm:$0xff] }
  0x34   :  { %329 = vmatpush1.msra.mxu0 %v94_v20  ;;  %406 = vmatpush1.msra.mxu1 %v96_v21  ;;  %v106_v47 = vrot.slane %v101_v42, %v105_v38  ;;  %v114_v48 = vrot.slane %v101_v42, %v113_v40  ;;  %v110_v51 = vrot.slane %v101_v42, %v109_v43  ;;  %v943_v38 = vld [vmem:[#allocation2] sm:$0xff] }
  0x35   :  { %330 = vmatprep.subr.mxu0 %v87_v22  ;;  %220 = vmatprep.mubr.f32.mxu0 %v837_v0  ;;  %v118_v52 = vrot.slane %v101_v42, %v117_v45  ;;  %v122_v60 = vrot.slane %v101_v42, %v121_v49  ;;  %v126_v1 = vrot.slane %v101_v42, %v125_v55 }
  0x36   :  { %297 = vmatprep.mubr.f32.mxu1 %v837_v0  ;;  %331 = vmatpush1.msra.mxu0 %v86_v23  ;;  %v134_v3 = vrot.slane %v101_v42, %v133_v57 }
  0x37   :  { %407 = vmatprep.subr.mxu1 %v89_v24  ;;  %684 = vmatmul.mubr.msk.f32.gmra.mxu0 %vm143_vm0, %v65_v25 }
  0x38   :  { %686 = vmatmul.mubr.msk.f32.gmra.mxu1 %vm143_vm0, %v65_v25  ;;  %332 = vmatprep.subr.mxu0 %v79_v26 }
  0x39   :  { %408 = vmatpush1.msra.mxu1 %v88_v27  ;;  %333 = vmatpush1.msra.mxu0 %v78_v28 }
  0x3a   :  { %409 = vmatprep.subr.mxu1 %v81_v29  ;;  %334 = vmatprep.subr.mxu0 %v71_v30 }
  0x3b   :  { %410 = vmatpush1.msra.mxu1 %v80_v31  ;;  %335 = vmatpush1.msra.mxu0 %v70_v32 }
  0x3c   :  { %368 = vmatprep.mubr.f32.mxu0 %v837_v0  ;;  %411 = vmatprep.subr.mxu1 %v73_v33 }
  0x3d   :  { %687 = vmatmul.mubr.msk.f32.vlgmr.msra.gmra.mxu0 %vm143_vm0, %v64_v17  ;;  %412 = vmatpush1.msra.mxu1 %v72_v34 }
  0x3e   :  { %445 = vmatprep.mubr.f32.mxu1 %v837_v0  ;;  %374 = vmatprep.mubr.f32.mxu0 %v837_v0 }
  0x3f   :  { %689 = vmatmul.mubr.msk.f32.vlgmr.msra.gmra.mxu1 %vm143_vm0, %v64_v17  ;;  %702 = vset.pattern.permute.xlu1 %v839_v37 }
  0x40   :  { %451 = vmatprep.mubr.f32.mxu1 %v837_v0  ;;  %v130_v0 = vrot.slane %v101_v42, %v129_v54  ;;  %703 = vset.pattern.permute.xlu0 %v839_v37 }
  0x41   :  { %688 = vmatmul.mubr.msk.f32.gmra.mxu0 %vm143_vm0, %v65_v25 }
  0x43   :  { %690 = vmatmul.mubr.msk.f32.gmra.mxu1 %vm143_vm0, %v65_v25 }
  0xf2   :  { %v216_v39 = vpop.f32.mrf.mxu0  ;;  %v293_v41 = vpop.f32.mrf.mxu1 }
  0xf3   :  { %v895_v58 = vadd.f32 %v216_v39, %v106_v47  ;;  %v897_v59 = vadd.f32 %v293_v41, %v114_v48  ;;  %v948_v41 = vld [vmem:[#allocation2 + $0x8] sm:$0xff] }
  0xf4   :  { %v218_v44 = vpop.f32.mrf.mxu0  ;;  %v295_v46 = vpop.f32.mrf.mxu1 }
  0xf5   :  { %v899_v62 = vadd.f32 %v218_v44, %v110_v51  ;;  %v901_v63 = vadd.f32 %v295_v46, %v118_v52  ;;  %v478_v4 = vmax.f32 %v895_v58, %v897_v59 }
  0xf7   :  { %v222_v50 = vpop.f32.mrf.mxu0  ;;  %v479_v12 = vmax.f32 %v899_v62, %v901_v63 }
  0xf8   :  { %v299_v53 = vpop.f32.mrf.mxu1  ;;  %v905_v5 = vadd.f32 %v222_v50, %v106_v47 }
  0xf9   :  { %v224_v56 = vpop.f32.mrf.mxu0  ;;  %v907_v6 = vadd.f32 %v299_v53, %v114_v48 }
  0xfa   :  { %v301_v61 = vpop.f32.mrf.mxu1  ;;  %v911_v8 = vadd.f32 %v224_v56, %v110_v51 }
  0xfb   :  { %v913_v9 = vadd.f32 %v301_v61, %v118_v52  ;;  %v487_v18 = vmax.f32 %v905_v5, %v907_v6 }
  0xfd   :  { %v370_v2 = vpop.f32.mrf.mxu0  ;;  %v488_v22 = vmax.f32 %v911_v8, %v913_v9 }
  0xfe   :  { %v909_v7 = vadd.f32 %v370_v2, %v122_v60 }
  0xff   :  { %v447_v10 = vpop.f32.mrf.mxu1  ;;  %v372_v11 = vpop.f32.mrf.mxu0 }
 0x100   :  { %v917_v13 = vadd.f32 %v447_v10, %v130_v0  ;;  %v919_v14 = vadd.f32 %v372_v11, %v126_v1  ;;  %v480_v15 = vmax.f32 %v478_v4, %v909_v7 }
 0x101   :  { %v449_v16 = vpop.f32.mrf.mxu1  ;;  %v376_v17 = vpop.f32.mrf.mxu0 }
 0x102   :  { %v924_v19 = vadd.f32 %v449_v16, %v134_v3  ;;  %v926_v20 = vadd.f32 %v376_v17, %v122_v60  ;;  %v481_v21 = vmax.f32 %v479_v12, %v919_v14  ;;  %v482_v25 = vmax.f32 %v480_v15, %v917_v13 }
 0x103   :  { %v453_v23 = vpop.f32.mrf.mxu1  ;;  %v378_v24 = vpop.f32.mrf.mxu0 }
 0x104   :  { %v489_v26 = vmax.f32 %v487_v18, %v926_v20  ;;  %v933_v27 = vadd.f32 %v453_v23, %v130_v0  ;;  %v935_v28 = vadd.f32 %v378_v24, %v126_v1  ;;  %v483_v29 = vmax.f32 %v481_v21, %v924_v19 }
 0x105   :  { %v455_v30 = vpop.f32.mrf.mxu1 }
 0x106   :  { %v490_v31 = vmax.f32 %v488_v22, %v935_v28  ;;  %v939_v32 = vadd.f32 %v455_v30, %v134_v3  ;;  %v484_v33 = vmax.f32 %v482_v25, %v483_v29  ;;  %v491_v34 = vmax.f32 %v489_v26, %v933_v27 }
 0x108   :  { %485 = vmax.xlane.f32.xlu0 %v484_v33  ;;  %v492_v35 = vmax.f32 %v490_v31, %v939_v32 }
 0x10a   :  { %v493_v36 = vmax.f32 %v491_v34, %v492_v35 }
 0x10c   :  { %494 = vmax.xlane.f32.xlu0 %v493_v36 }
 0x191   :  { %v486_v39 = vpop.xlane.xlu0 %485 }
 0x192   :  { %v946_v40 = vmax.f32 %v943_v38, %v486_v39 }
 0x194   :  { %v500_v42 = vsub.f32 %v943_v38, %v946_v40  ;;  %589 = vst.msk [vmem:[#allocation2] sm:$0xff] %vm58_vm1, %v946_v40  ;;  %510 = vperm.xlu1 %702, %v946_v40  }
 0x195   :  { %v495_v43 = vpop.xlane.xlu0 %494 }
 0x196   :  { %v956_v44 = vmax.f32 %v948_v41, %v495_v43 }
 0x198   :  { %v501_v45 = vsub.f32 %v948_v41, %v956_v44  ;;  %590 = vst.msk [vmem:[#allocation2 + $0x8] sm:$0xff] %vm58_vm1, %v956_v44  ;;  %515 = vperm.xlu1 %702, %v956_v44  }
 0x19b   :  { %v594_v44 = vld [vmem:[#allocation2] sm:$0xff] }
 0x20f   :  { %v511_v46 = vpop.permute.xlu1 %510 }
 0x210   :  { %v518_v47 = vsub.f32 %v895_v58, %v511_v46  ;;  %v519_v48 = vsub.f32 %v899_v62, %v511_v46  ;;  %v520_v49 = vsub.f32 %v897_v59, %v511_v46  ;;  %v521_v50 = vsub.f32 %v901_v63, %v511_v46 }
 0x211   :  { %v522_v53 = vsub.f32 %v909_v7, %v511_v46  ;;  %v523_v1 = vsub.f32 %v919_v14, %v511_v46  ;;  %v524_v12 = vsub.f32 %v917_v13, %v511_v46  ;;  %v525_v16 = vsub.f32 %v924_v19, %v511_v46 }
 0x212   :  { %v534_v51 = vmul.f32 1.442695, %v518_v47  ;;  %v536_v52 = vmul.f32 1.442695, %v519_v48  ;;  %v538_v54 = vmul.f32 1.442695, %v520_v49 }
 0x213   :  { %v540_v55 = vmul.f32 1.442695, %v521_v50  ;;  %v516_v56 = vpop.permute.xlu1 %515  ;;  %v542_v4 = vmul.f32 1.442695, %v522_v53  ;;  %v544_v18 = vmul.f32 1.442695, %v523_v1 }
 0x214   :  { %704 = vpow2.f32 %v534_v51  ;;  %v526_v57 = vsub.f32 %v905_v5, %v516_v56  ;;  %v527_v60 = vsub.f32 %v911_v8, %v516_v56  ;;  %v528_v61 = vsub.f32 %v907_v6, %v516_v56 }
 0x215   :  { %706 = vpow2.f32 %v536_v52  ;;  %v529_v0 = vsub.f32 %v913_v9, %v516_v56  ;;  %v530_v10 = vsub.f32 %v926_v20, %v516_v56  ;;  %v531_v17 = vsub.f32 %v935_v28, %v516_v56 }
 0x216   :  { %v550_v2 = vmul.f32 1.442695, %v526_v57  ;;  %v552_v3 = vmul.f32 1.442695, %v527_v60  ;;  %708 = vpow2.f32 %v538_v54  ;;  %v554_v11 = vmul.f32 1.442695, %v528_v61 }
 0x217   :  { %710 = vpow2.f32 %v540_v55  ;;  %v556_v15 = vmul.f32 1.442695, %v529_v0  ;;  %v558_v21 = vmul.f32 1.442695, %v530_v10  ;;  %v546_v22 = vmul.f32 1.442695, %v524_v12 }
 0x218   :  { %712 = vpow2.f32 %v550_v2  ;;  %v532_v23 = vsub.f32 %v933_v27, %v516_v56  ;;  %v548_v24 = vmul.f32 1.442695, %v525_v16  ;;  %v533_v25 = vsub.f32 %v939_v32, %v516_v56 }
 0x219   :  { %714 = vpow2.f32 %v552_v3  ;;  %v560_v26 = vmul.f32 1.442695, %v531_v17  ;;  %v504_v16 = vmul.f32 1.442695, %v501_v45 }
 0x21a   :  { %716 = vpow2.f32 %v542_v4  ;;  %v562_v29 = vmul.f32 1.442695, %v532_v23  ;;  %v564_v33 = vmul.f32 1.442695, %v533_v25 }
 0x21b   :  { %718 = vpow2.f32 %v554_v11 }
 0x21c   :  { %720 = vpow2.f32 %v556_v15  ;;  %v502_v15 = vmul.f32 1.442695, %v500_v42 }
 0x21d   :  { %722 = vpow2.f32 %v544_v18  ;;  %v498_v18 = vld [vmem:[#allocation3] sm:$0xff] }
 0x21e   :  { %724 = vpow2.f32 %v558_v21 }
 0x21f   :  { %726 = vpow2.f32 %v546_v22 }
 0x220   :  { %728 = vpow2.f32 %v548_v24  ;;  %v499_v24 = vld [vmem:[#allocation3 + $0x8] sm:$0xff] }
 0x221   :  { %v705_v30 = vpop.eup %704  ;;  %730 = vpow2.f32 %v560_v26 }
 0x222   :  { %v707_v31 = vpop.eup %706  ;;  %732 = vpow2.f32 %v562_v29 }
 0x223   :  { %v566_v34 = vadd.f32 %v707_v31, %v705_v30  ;;  %v709_v35 = vpop.eup %708  ;;  %734 = vpow2.f32 %v564_v33 }
 0x224   :  { %v711_v36 = vpop.eup %710  ;;  %736 = vpow2.f32 %v502_v15 }
 0x225   :  { %v567_v37 = vadd.f32 %v709_v35, %v566_v34  ;;  %v713_v39 = vpop.eup %712  ;;  %738 = vpow2.f32 %v504_v16  ;;  %v595_v34 = vld [vmem:[#allocation2 + $0x8] sm:$0xff] }
 0x226   :  { %v715_v43 = vpop.eup %714 }
 0x227   :  { %v568_v46 = vadd.f32 %v711_v36, %v567_v37  ;;  %v717_v47 = vpop.eup %716  ;;  %v575_v48 = vadd.f32 %v715_v43, %v713_v39 }
 0x228   :  { %v719_v49 = vpop.eup %718 }
 0x229   :  { %v569_v50 = vadd.f32 %v717_v47, %v568_v46  ;;  %v721_v51 = vpop.eup %720  ;;  %v576_v52 = vadd.f32 %v719_v49, %v575_v48 }
 0x22a   :  { %v723_v53 = vpop.eup %722 }
 0x22b   :  { %v725_v54 = vpop.eup %724  ;;  %v570_v55 = vadd.f32 %v723_v53, %v569_v50  ;;  %v577_v56 = vadd.f32 %v721_v51, %v576_v52 }
 0x22c   :  { %v727_v57 = vpop.eup %726 }
 0x22d   :  { %v729_v60 = vpop.eup %728  ;;  %v571_v61 = vadd.f32 %v727_v57, %v570_v55  ;;  %v578_v0 = vadd.f32 %v725_v54, %v577_v56 }
 0x22e   :  { %v731_v1 = vpop.eup %730 }
 0x22f   :  { %v572_v2 = vadd.f32 %v729_v60, %v571_v61  ;;  %v579_v3 = vadd.f32 %v731_v1, %v578_v0  ;;  %v733_v4 = vpop.eup %732 }
 0x230   :  { %v735_v11 = vpop.eup %734 }
 0x231   :  { %573 = vadd.xlane.f32.xlu0 %v572_v2  ;;  %v580_v10 = vadd.f32 %v733_v4, %v579_v3  ;;  %v737_v17 = vpop.eup %736 }
 0x232   :  { %v506_v21 = vmul.f32 %v737_v17, %v498_v18  ;;  %v739_v22 = vpop.eup %738 }
 0x233   :  { %v581_v12 = vadd.f32 %v735_v11, %v580_v10  ;;  %v507_v26 = vmul.f32 %v739_v22, %v499_v24 }
 0x235   :  { %582 = vadd.xlane.f32.xlu1 %v581_v12 }
 0x2ba   :  { %v574_v23 = vpop.xlane.xlu0 %573 }
 0x2bb   :  { %v584_v25 = vadd.f32 %v574_v23, %v506_v21 }
 0x2bd   :  { %587 = vst.msk [vmem:[#allocation3] sm:$0xff] %vm58_vm1, %v584_v25 }
 0x2be   :  { %v583_v29 = vpop.xlane.xlu1 %582 }
 0x2bf   :  { %v585_v30 = vadd.f32 %v583_v29, %v507_v26 }
 0x2c1   :  { %588 = vst.msk [vmem:[#allocation3 + $0x8] sm:$0xff] %vm58_vm1, %v585_v30 }
 0x2c4   :  { %v596_v38 = vld [vmem:[#allocation3] sm:$0xff] }
 0x2c5   :  { %740 = vlog2.f32 %v596_v38 }
 0x2c8   :  { %v597_v40 = vld [vmem:[#allocation3 + $0x8] sm:$0xff] }
 0x2c9   :  { %742 = vlog2.f32 %v597_v40 }
 0x2d2   :  { %v741_v41 = vpop.eup %740 }
 0x2d3   :  { %v599_v42 = vmul.f32 0.6931472, %v741_v41 }
 0x2d5   :  { %v602_v45 = vadd.f32 %v599_v42, %v594_v44 }
 0x2d6   :  { %v743_v31 = vpop.eup %742 }
 0x2d7   :  { %622 = vperm.xlu0 %703, %v602_v45   ;;  %v601_v33 = vmul.f32 0.6931472, %v743_v31 }
 0x2d9   :  { %v603_v35 = vadd.f32 %v601_v33, %v595_v34 }
 0x2db   :  { %627 = vperm.xlu1 %702, %v603_v35  }
 0x352   :  { %v623_v36 = vpop.permute.xlu0 %622 }
 0x353   :  { %v630_v37 = vsub.f32 %v895_v58, %v623_v36  ;;  %v631_v39 = vsub.f32 %v899_v62, %v623_v36  ;;  %v632_v43 = vsub.f32 %v897_v59, %v623_v36  ;;  %v633_v46 = vsub.f32 %v901_v63, %v623_v36 }
 0x354   :  { %v634_v47 = vsub.f32 %v909_v7, %v623_v36  ;;  %v635_v48 = vsub.f32 %v919_v14, %v623_v36  ;;  %v636_v49 = vsub.f32 %v917_v13, %v623_v36  ;;  %v637_v50 = vsub.f32 %v924_v19, %v623_v36 }
 0x355   :  { %646 = vst [vmem:[#allocation10] sm:$0xff] %v630_v37  ;;  %647 = vst [vmem:[#allocation10 + $0x8] sm:$0xff] %v631_v39 }
 0x356   :  { %648 = vst [vmem:[#allocation10 + $0x10] sm:$0xff] %v632_v43  ;;  %649 = vst [vmem:[#allocation10 + $0x18] sm:$0xff] %v633_v46  ;;  %v628_v58 = vpop.permute.xlu1 %627 }
 0x357   :  { %650 = vst [vmem:[#allocation10 + $0x20] sm:$0xff] %v634_v47  ;;  %651 = vst [vmem:[#allocation10 + $0x28] sm:$0xff] %v635_v48  ;;  %v638_v59 = vsub.f32 %v905_v5, %v628_v58  ;;  %v639_v62 = vsub.f32 %v911_v8, %v628_v58  ;;  %v640_v63 = vsub.f32 %v907_v6, %v628_v58 }
 0x358   :  { %652 = vst [vmem:[#allocation10 + $0x30] sm:$0xff] %v636_v49  ;;  %653 = vst [vmem:[#allocation10 + $0x38] sm:$0xff] %v637_v50  ;;  %v641_v7 = vsub.f32 %v913_v9, %v628_v58  ;;  %v642_v13 = vsub.f32 %v926_v20, %v628_v58  ;;  %v643_v14 = vsub.f32 %v935_v28, %v628_v58 }
 0x359   :  { %v644_v19 = vsub.f32 %v933_v27, %v628_v58  ;;  %v645_v51 = vsub.f32 %v939_v32, %v628_v58  ;;  %654 = vst [vmem:[#allocation10 + $0x40] sm:$0xff] %v638_v59  ;;  %655 = vst [vmem:[#allocation10 + $0x48] sm:$0xff] %v639_v62 }
 0x35a   :  { %656 = vst [vmem:[#allocation10 + $0x50] sm:$0xff] %v640_v63  ;;  %657 = vst [vmem:[#allocation10 + $0x58] sm:$0xff] %v641_v7 }
 0x35b   :  { %658 = vst [vmem:[#allocation10 + $0x60] sm:$0xff] %v642_v13  ;;  %659 = vst [vmem:[#allocation10 + $0x68] sm:$0xff] %v643_v14 }
 0x35c   :  { %660 = vst [vmem:[#allocation10 + $0x70] sm:$0xff] %v644_v19  ;;  %661 = vst [vmem:[#allocation10 + $0x78] sm:$0xff] %v645_v51 }
 0x35d   :  { %815 = shalt.err (!%p812_p5)
}
 0x35e   :  { %673 = dma.vmem_to_hbm [thread:$0]  %s668_s2, 2048, %s1012_s3, [#allocation6], %s831_s15, %s831_s15, %s832_s16  }
 0x35f   :  { %828 = dma.done.wait [#allocation6], 2048  }
 0x360   :  { %829 = vsyncadd [#allocation6], 4294965248 }
 0x361   :  { %677 = vsyncpa [#allocation5], 1 }
 0x362   :  { %678 = vsyncpa [#allocation8], 1 }
 0x363   :  { %679 = vsyncpa [#allocation6], 1 }

</bundles_post_ra>
